<compile_context>
chip_gen: v7x
topology: tpu7x:2x2x1
jax: 0.10.0
libtpu: 0.0.40
codegen_flags: <defaults>
</compile_context>

<pallas_src>
import functools

import numpy as np
import jax
import jax.numpy as jnp
from jax import lax
from jax.experimental import pallas as pl
from jax.experimental.pallas import tpu as pltpu


def _round_up(x: int, m: int) -> int:
    return (x + m - 1) // m * m


def _vmem_limit_bytes() -> int:
    """Per-generation scoped-VMEM budget (v5e/v6e: 128 MiB phys, v7x: 64 MiB phys)."""
    try:
        phys = int(pltpu.get_tpu_info().vmem_capacity_bytes)
    except Exception:
        phys = 64 * 1024 * 1024          # conservative fallback (v7x physical size)
    return int(min(phys * 3 // 4, 64 * 1024 * 1024))


def _parabolic_dilate_rows_kernel(x_ref, t_ref, o_ref, *, zsq, pad, L, use_roll):
    """out[r, l] = max_j ( x[r, l + j - pad] + (-zsq[j]) / (4 * t[r]) ), -inf outside [0, L)."""
    x = x_ref[...].astype(jnp.float32)        # (TR, L) — f32 compute (see bf16 note above)
    t = t_ref[...]                            # (TR, 1) float32
    inv4t = 1.0 / (4.0 * t)                   # hoisted: one divide per tile, taps are multiplies
    ks = len(zsq)

    if use_roll:
        # Aligned path: shift via XLU lane-rotate + iota boundary mask (no concat, no slices).
        col = lax.broadcasted_iota(jnp.int32, x.shape, 1)
        acc = x + (-zsq[pad]) * inv4t                         # center tap (shift 0)
        for j in range(ks):                                   # ks is tiny & static -> unrolled
            if j == pad:
                continue
            s = j - pad                                       # want out[:, l] = x[:, l + s]
            shifted = pltpu.roll(x, (-s) % L, 1)              # jnp.roll semantics
            h_j = (-zsq[j]) * inv4t
            valid = (col >= -s) if s < 0 else (col < (L - s))
            acc = jnp.maximum(acc, jnp.where(valid, shifted + h_j, -jnp.inf))
    else:
        # Unaligned-L fallback (single-vreg scale): fused -inf pad built in VMEM + static slices.
        rows = x.shape[0]
        if pad > 0:
            ninf = jnp.full((rows, pad), -jnp.inf, dtype=jnp.float32)
            xp = jnp.concatenate([ninf, x, ninf], axis=1)     # (TR, L + 2*pad)
        else:
            xp = x
        acc = xp[:, 0:L] + (-zsq[0]) * inv4t
        for j in range(1, ks):
            acc = jnp.maximum(acc, xp[:, j:j + L] + (-zsq[j]) * inv4t)

    o_ref[...] = acc.astype(o_ref.dtype)


@functools.partial(jax.jit, static_argnames=("ks", "stride", "row_block"))
def parabolic_pool_1d_fast(f, t, *, ks=3, stride=2, row_block=None):
    """JAX/Pallas port of ParabolicPool1DFast.forward.

    f: (B, C, L)   signal (any float dtype; compute is f32)
    t: (C,)        learnable parabola "time" parameter
    """
    B, C, L = f.shape
    assert ks % 2 == 1, "odd kernel_size required (the PyTorch module implies output length L)"
    pad = ks // 2
    Ls = L // stride
    if Ls == 0:
        return jnp.zeros((B, C, 0), dtype=f.dtype)

    # Static per-tap z^2 constants (identical to torch.linspace(-ks//2 + 1, ks//2, ks) ** 2).
    z_i = np.linspace(float(-ks // 2 + 1), float(ks // 2), ks, dtype=np.float32)
    zsq = tuple(float(v) for v in (z_i * z_i))

    # --- bug-compatible flat as_strided: only a prefix of dilated rows is ever read ---------
    # result[b, c, i] = dil_flat[b + c + i*stride]; compute only the rows covering that range.
    max_flat = (B - 1) + (C - 1) + (Ls - 1) * stride
    # Degenerate shapes where PyTorch's as_strided would read out-of-bounds storage are UB there.
    assert max_flat < B * C * L, "as_strided window exceeds input storage (UB in the PyTorch module)"
    R = max_flat // L + 1

    x_rows = f.reshape(B * C, L)[:R]                              # native dtype, tiny slice
    t_rows = jnp.tile(t.astype(jnp.float32), B)[:R, None]         # (R, 1) per-row t

    vmem_limit = _vmem_limit_bytes()
    if row_block is None:
        in_b = f.dtype.itemsize                                   # output dtype == input dtype
        # Pipeline in/out blocks are double-buffered; in-kernel f32 temporaries (cast, shifted
        # tap, select, accumulator) are single-buffered.  Budget = half the scoped VMEM limit.
        bytes_per_row = L * (2 * in_b + 2 * in_b + 5 * 4) + 32
        row_block = (vmem_limit // 2) // max(bytes_per_row, 1)
        row_block = max(8, min(row_block, 16384)) // 8 * 8

    # Row-block choice: as big as the VMEM budget allows, but keep >= 2 grid steps when there
    # are enough rows so the "parallel" axis can shard across both TensorCores (v7x megacore).
    if R > row_block:
        TR = row_block
    elif R >= 64:
        TR = min(row_block, _round_up(pl.cdiv(R, 8), 8))          # ~8 grid steps
    elif R >= 16:
        TR = min(row_block, _round_up(pl.cdiv(R, 2), 8))          # >= 2 grid steps
    else:
        TR = R                                                    # single tiny block
    grid = (pl.cdiv(R, TR),)

    # Mosaic lane-rotate only supports (8,128)-aligned shapes.
    use_roll = (L % 128 == 0) and (TR % 8 == 0)

    dilated_rows = pl.pallas_call(
        functools.partial(_parabolic_dilate_rows_kernel,
                          zsq=zsq, pad=pad, L=L, use_roll=use_roll),
        out_shape=jax.ShapeDtypeStruct((R, L), f.dtype),
        grid=grid,
        in_specs=[
            pl.BlockSpec((TR, L), lambda r: (r, 0)),
            pl.BlockSpec((TR, 1), lambda r: (r, 0)),
        ],
        out_specs=pl.BlockSpec((TR, L), lambda r: (r, 0)),
        compiler_params=pltpu.CompilerParams(
            dimension_semantics=("parallel",),
            vmem_limit_bytes=vmem_limit,
        ),
    )(x_rows, t_rows)

    # torch.as_strided(dil, size=(B, C, Ls), stride=(1, 1, stride)) over flat storage,
    # reproduced with B+C-1 strided slices + static stacking (no big gather, no extra HBM pass).
    flat = dilated_rows.reshape(-1)
    table = jnp.stack(
        [lax.slice(flat, (o,), (o + (Ls - 1) * stride + 1,), (stride,))
         for o in range(B + C - 1)],
        axis=0,
    )                                                             # (B+C-1, Ls); row o is offset b+c
    return jnp.stack(
        [lax.slice_in_dim(table, b, b + C, axis=0) for b in range(B)], axis=0
    )                                                             # out[b, c] = table[b + c]


def _reference(f, t, *, ks=3, stride=2):
    """Pure-JAX transliteration of the PyTorch forward (full dilation + flat as_strided)."""
    B, C, L = f.shape
    pad = ks // 2
    z_i = jnp.asarray(np.linspace(float(-ks // 2 + 1), float(ks // 2), ks, dtype=np.float32))
    h = -(z_i ** 2)[None, :] / (4.0 * t.astype(jnp.float32)[:, None])           # (C, ks)
    fp = jnp.pad(f.astype(jnp.float32), ((0, 0), (0, 0), (pad, pad)),
                 constant_values=-jnp.inf)
    cands = jnp.stack([fp[:, :, j:j + L] + h[None, :, j:j + 1] for j in range(ks)], axis=-1)
    out = cands.max(-1).astype(f.dtype)                                          # (B, C, L)
    flat = out.reshape(-1)
    idx = (jnp.arange(B)[:, None, None]
           + jnp.arange(C)[None, :, None]
           + stride * jnp.arange(L // stride)[None, None, :])
    return flat[idx]


if __name__ == "__main__":
    B, C, L = 2, 4, 16
    ks, stride = 3, 2

    key = jax.random.PRNGKey(0)
    k_f, k_t = jax.random.split(key)
    f = jax.random.normal(k_f, (B, C, L), dtype=jnp.float32)
    # Deterministic init matching torch.nn.init.uniform_(t, a=1e4, b=2e4)
    t = jax.random.uniform(k_t, (C,), minval=10000.0, maxval=20000.0, dtype=jnp.float32)

    out = parabolic_pool_1d_fast(f, t, ks=ks, stride=stride)
    out = jax.block_until_ready(out)

    assert out.shape == (B, C, L // stride), out.shape
    ref = _reference(f, t, ks=ks, stride=stride)
    assert jnp.allclose(out, ref, atol=1e-6, rtol=1e-6), "mismatch vs reference"

    print("KERNEL_OK")
</pallas_src>

<mosaic_0001>
module attributes {stable_mosaic.version = 11 : i64} {
  func.func @_parabolic_dilate_rows_kernel(%arg0: i32, %arg1: memref<2x16xf32, #tpu.memory_space<vmem>>, %arg2: memref<2x1xf32, #tpu.memory_space<vmem>>, %arg3: memref<2x16xf32, #tpu.memory_space<vmem>>) attributes {dimension_semantics = [#tpu.dimension_semantics<parallel>], iteration_bounds = array<i64: 1>, scalar_prefetch = 0 : i64, scratch_operands = 0 : i64, tpu.core_type = #tpu.core_type<tc>, window_params = [{transform_indices = @transform_0, window_bounds = array<i64: 2, 16>}, {transform_indices = @transform_1, window_bounds = array<i64: 2, 1>}, {transform_indices = @transform_2, window_bounds = array<i64: 2, 16>}]} {
    %c0 = arith.constant 0 : index
    %c0_0 = arith.constant 0 : index
    %0 = vector.load %arg1[%c0, %c0_0] : memref<2x16xf32, #tpu.memory_space<vmem>>, vector<2x16xf32>
    %c0_1 = arith.constant 0 : index
    %c0_2 = arith.constant 0 : index
    %1 = vector.load %arg2[%c0_1, %c0_2] : memref<2x1xf32, #tpu.memory_space<vmem>>, vector<2x1xf32>
    %cst = arith.constant 4.000000e+00 : f32
    %2 = vector.broadcast %cst : f32 to vector<2x1xf32>
    %3 = arith.mulf %2, %1 : vector<2x1xf32>
    %cst_3 = arith.constant 1.000000e+00 : f32
    %4 = vector.broadcast %cst_3 : f32 to vector<2x1xf32>
    %5 = arith.divf %4, %3 : vector<2x1xf32>
    %cst_4 = arith.constant 0xFF800000 : f32
    %6 = vector.broadcast %cst_4 : f32 to vector<2x1xf32>
    %7 = tpu.concatenate %6, %0, %6 in 1 : vector<2x1xf32>, vector<2x16xf32>, vector<2x1xf32> -> vector<2x18xf32>
    %8 = vector.extract_strided_slice %7 {offsets = [0, 0], sizes = [2, 16], strides = [1, 1]} : vector<2x18xf32> to vector<2x16xf32>
    %cst_5 = arith.constant -1.000000e+00 : f32
    %9 = vector.broadcast %cst_5 : f32 to vector<2x1xf32>
    %10 = arith.mulf %9, %5 : vector<2x1xf32>
    %11 = vector.broadcast %10 : vector<2x1xf32> to vector<2x16xf32>
    %12 = arith.addf %8, %11 : vector<2x16xf32>
    %13 = vector.extract_strided_slice %7 {offsets = [0, 1], sizes = [2, 16], strides = [1, 1]} : vector<2x18xf32> to vector<2x16xf32>
    %cst_6 = arith.constant -0.000000e+00 : f32
    %14 = vector.broadcast %cst_6 : f32 to vector<2x1xf32>
    %15 = arith.mulf %14, %5 : vector<2x1xf32>
    %16 = vector.broadcast %15 : vector<2x1xf32> to vector<2x16xf32>
    %17 = arith.addf %13, %16 : vector<2x16xf32>
    %18 = arith.maximumf %12, %17 : vector<2x16xf32>
    %19 = vector.extract_strided_slice %7 {offsets = [0, 2], sizes = [2, 16], strides = [1, 1]} : vector<2x18xf32> to vector<2x16xf32>
    %cst_7 = arith.constant -1.000000e+00 : f32
    %20 = vector.broadcast %cst_7 : f32 to vector<2x1xf32>
    %21 = arith.mulf %20, %5 : vector<2x1xf32>
    %22 = vector.broadcast %21 : vector<2x1xf32> to vector<2x16xf32>
    %23 = arith.addf %19, %22 : vector<2x16xf32>
    %24 = arith.maximumf %18, %23 : vector<2x16xf32>
    %c0_8 = arith.constant 0 : index
    %c0_9 = arith.constant 0 : index
    %25 = vector.load %arg3[%c0_8, %c0_9] : memref<2x16xf32, #tpu.memory_space<vmem>>, vector<2x16xf32>
    tpu.vector_store %arg3[%c0_8, %c0_9], %24 {strides = array<i32>} : memref<2x16xf32, #tpu.memory_space<vmem>>, vector<2x16xf32>,
    return
  }
  func.func @transform_0(%arg0: i32) -> (i32, i32) {
    %c0_i32 = arith.constant 0 : i32
    %c0_i32_0 = arith.constant 0 : i32
    return %arg0, %c0_i32 : i32, i32
  }
  func.func @transform_1(%arg0: i32) -> (i32, i32) {
    %c0_i32 = arith.constant 0 : i32
    %c0_i32_0 = arith.constant 0 : i32
    return %arg0, %c0_i32 : i32, i32
  }
  func.func @transform_2(%arg0: i32) -> (i32, i32) {
    %c0_i32 = arith.constant 0 : i32
    %c0_i32_0 = arith.constant 0 : i32
    return %arg0, %c0_i32 : i32, i32
  }
}

</mosaic_0001>

<bundles_post_ra>
// kernel: parabolic_pool_1d_fast.1
= control target key start
LH: loop header
LB: loop body
LE: loop exit
PB: predicated region body
PF: predicated region fallthrough
CT: control target
= control target key end

     0   :  { %v61_v0 = vmov 0   ;;  %s62_s13 = smov 1   ;;  %vm20_vm0 = vcmask 7168   ;;  %vm22_vm1 = vcmask 138240   ;;  %vm48_vm2 = vcmask 123904   ;;  %s89_s1 = inlined_call_operand.vmem [shape: f32[2,1], index: 1, kind: input, shape index: {}]   ;;  %s90_s0 = inlined_call_operand.vmem [shape: f32[2,16], index: 0, kind: input, shape index: {}]   ;;  %s91_s2 = inlined_call_operand.vmem [shape: f32[2,16], index: 2, kind: output, shape index: {}]  }
   0x1   :  { %58 = vset.pattern.permute.xlu0 %v61_v0  ;;  %v12_v1 = vld [vmem:[%s89_s1] sm:$0x3]  ;;  %s63_s1 = smov 127  }
   0x2   :  { %v11_v2 = vld [vmem:[%s90_s0] sm:$0x3]  ;;  %v13_v3 = vmul.f32 4.0, %v12_v1  ;;  %s64_s0 = smov 126  }
   0x3   :  { %17 = vrot.lane.b32.xlu1 %v11_v2, %s62_s13 }
   0x4   :  { %59 = vrcp.f32 %v13_v3 }
   0xe   :  { %v60_v4 = vpop.eup %59 }
   0xf   :  { %v31_v5 = vmul.f32 -0.0, %v60_v4  ;;  %v24_v6 = vmul.f32 -1.0, %v60_v4 }
  0x11   :  { %34 = vperm.xlu0 %58, %v31_v5  }
  0x15   :  { %27 = vperm.xlu0 %58, %v24_v6  }
  0x75   :  { %v18_v7 = vpop.permute.xlu1 %17 }
  0x76   :  { %v21_v8 = vsel %vm20_vm0, -inf, %v18_v7 }
  0x77   :  { %v23_v9 = vsel %vm22_vm1, %v21_v8, -inf }
  0x90   :  { %v35_v10 = vpop.permute.xlu0 %34 }
  0x91   :  { %v37_v11 = vadd.f32 %v35_v10, %v23_v9 }
  0x93   :  { %39 = vrot.lane.b32.xlu1 %v37_v11, %s63_s1 }
  0x94   :  { %v28_v12 = vpop.permute.xlu0 %27 }
  0x95   :  { %v30_v13 = vadd.f32 %v28_v12, %v23_v9 }
  0x97   :  { %44 = vrot.lane.b32.xlu0 %v30_v13, %s64_s0 }
 0x105   :  { %v40_v14 = vpop.permute.xlu1 %39 }
 0x106   :  { %v42_v15 = vmax.f32 %v30_v13, %v40_v14 }
 0x109   :  { %v45_v16 = vpop.permute.xlu0 %44 }
 0x10a   :  { %v47_v17 = vmax.f32 %v42_v15, %v45_v16 }
 0x10c   :  { %49 = vst.msk [vmem:[%s91_s2] sm:$0x3] %vm48_vm2, %v47_v17 }

</bundles_post_ra>
